<compile_context>
chip_gen: v6e
topology: v6e:2x2x1
jax: 0.10.0
libtpu: 0.0.40
codegen_flags: <defaults>
</compile_context>

<pallas_src>
import functools

import jax
import jax.numpy as jnp
from jax.experimental import pallas as pl
from jax.experimental.pallas import tpu as pltpu

EPS = 1e-5  # torch.nn.InstanceNorm2d default eps

_VMEM_TILE_BUDGET = 16 * 1024 * 1024   # streamed working-set target (double-buffered)
_MAX_TILE_LANES = 2048                 # lane-dense sweet spot (multiple of 128)


def _pick_hw_tile(hw, streamed_rows, bytes_per_elem):
    """Largest multiple-of-128 tile that divides HW and fits the VMEM budget."""
    if hw % 128 != 0:
        return hw  # block must equal the full dim when HW is not lane-aligned
    max_t = _VMEM_TILE_BUDGET // max(1, streamed_rows * bytes_per_elem * 2)
    cap = min(max(128, (max_t // 128) * 128), _MAX_TILE_LANES, hw)
    t = cap - cap % 128
    while t >= 128:
        if hw % t == 0:
            return t
        t -= 128
    return hw


def _stats_kernel(x_ref, mean_ref, inv_std_ref, sum_ref, sumsq_ref, *, hw_total):
    t = pl.program_id(1)

    @pl.when(t == 0)
    def _():
        sum_ref[...] = jnp.zeros_like(sum_ref)
        sumsq_ref[...] = jnp.zeros_like(sumsq_ref)

    x = x_ref[0].astype(jnp.float32)                              # [C, T]
    # Fused single pass: per-channel sum and sum-of-squares together (f32 accumulation;
    # inputs here are zero-mean-ish activations so E[x^2]-E[x]^2 cancellation is benign).
    sum_ref[...] += jnp.sum(x, axis=-1, keepdims=True)
    sumsq_ref[...] += jnp.sum(x * x, axis=-1, keepdims=True)

    @pl.when(t == pl.num_programs(1) - 1)
    def _():
        inv_n = 1.0 / hw_total
        mean = sum_ref[...] * inv_n
        var = sumsq_ref[...] * inv_n - mean * mean                # biased variance
        mean_ref[0] = mean
        inv_std_ref[0] = jax.lax.rsqrt(var + EPS)


def _adain_kernel(x_ref, s_ref, mean_ref, inv_ref,
                  w1_ref, b1_ref, w2g_ref, b2g_ref, w2b_ref, b2b_ref, o_ref):
    x = x_ref[0]                                                  # [C, T]  (input dtype)
    s = s_ref[0]                                                  # [Cs, T] (MXU operand, kept in input dtype)

    # InstanceNorm application with precomputed per-(n, c) stats.
    normalized = (x.astype(jnp.float32) - mean_ref[0]) * inv_ref[0]   # [C, T] f32

    # 1x1 convs == channel-dim matmuls on the MXU (f32 accumulation). Operands stay in
    # the caller's dtype, so bf16 inputs/weights hit the bf16-native MXU path on v5e/v6e.
    h = jnp.dot(w1_ref[...], s, preferred_element_type=jnp.float32) + b1_ref[...]
    h = jnp.maximum(h, 0.0).astype(w2g_ref.dtype)                 # [hidden, T]
    gamma = jnp.dot(w2g_ref[...], h, preferred_element_type=jnp.float32) + b2g_ref[...]
    beta = jnp.dot(w2b_ref[...], h, preferred_element_type=jnp.float32) + b2b_ref[...]

    o_ref[0] = (normalized * (1.0 + gamma) + beta).astype(o_ref.dtype)


def adain_forward(x, s, w1, b1, w2, b2):
    """x: [N, C, H, W], s: [N, Cs, H, W] (NCHW). Returns [N, C, H, W]."""
    N, C, H, W = x.shape
    _, Cs, _, _ = s.shape
    HW = H * W
    hidden = w1.shape[0]

    x2 = x.reshape(N, C, HW)
    s2 = s.reshape(N, Cs, HW)

    # Split the second 1x1 conv into gamma/beta halves on the host (avoids slicing a
    # [2C, T] tile at a non-(8,128)-aligned sublane boundary inside the kernel).
    w2g, w2b = w2[:C], w2[C:]
    b2g, b2b = b2[:C], b2[C:]

    T = _pick_hw_tile(HW, 2 * C + Cs, jnp.dtype(x.dtype).itemsize)
    n_t = HW // T

    # ---- pass 1: per-(n, c) mean and rsqrt(var + eps) ----
    mean, inv_std = pl.pallas_call(
        functools.partial(_stats_kernel, hw_total=float(HW)),
        out_shape=(jax.ShapeDtypeStruct((N, C, 1), jnp.float32),
                   jax.ShapeDtypeStruct((N, C, 1), jnp.float32)),
        grid_spec=pltpu.PrefetchScalarGridSpec(
            num_scalar_prefetch=0,
            grid=(N, n_t),
            in_specs=[pl.BlockSpec((1, C, T), lambda n, t: (n, 0, t))],
            out_specs=[pl.BlockSpec((1, C, 1), lambda n, t: (n, 0, 0)),
                       pl.BlockSpec((1, C, 1), lambda n, t: (n, 0, 0))],
            scratch_shapes=[pltpu.VMEM((C, 1), jnp.float32),
                            pltpu.VMEM((C, 1), jnp.float32)]),
        compiler_params=pltpu.CompilerParams(
            dimension_semantics=("parallel", "arbitrary"),
            vmem_limit_bytes=32 * 1024 * 1024),
    )(x2)

    # ---- pass 2: normalize + style MLP + modulate (fully parallel over (N, HW tiles)) ----
    out = pl.pallas_call(
        _adain_kernel,
        out_shape=jax.ShapeDtypeStruct((N, C, HW), x.dtype),
        grid_spec=pltpu.PrefetchScalarGridSpec(
            num_scalar_prefetch=0,
            grid=(N, n_t),
            in_specs=[
                pl.BlockSpec((1, C, T), lambda n, t: (n, 0, t)),    # x tile
                pl.BlockSpec((1, Cs, T), lambda n, t: (n, 0, t)),   # s tile
                pl.BlockSpec((1, C, 1), lambda n, t: (n, 0, 0)),    # mean (per sample)
                pl.BlockSpec((1, C, 1), lambda n, t: (n, 0, 0)),    # inv_std (per sample)
                pl.BlockSpec((hidden, Cs), lambda n, t: (0, 0)),    # w1
                pl.BlockSpec((hidden, 1), lambda n, t: (0, 0)),     # b1
                pl.BlockSpec((C, hidden), lambda n, t: (0, 0)),     # w2 gamma half
                pl.BlockSpec((C, 1), lambda n, t: (0, 0)),          # b2 gamma half
                pl.BlockSpec((C, hidden), lambda n, t: (0, 0)),     # w2 beta half
                pl.BlockSpec((C, 1), lambda n, t: (0, 0)),          # b2 beta half
            ],
            out_specs=pl.BlockSpec((1, C, T), lambda n, t: (n, 0, t))),
        compiler_params=pltpu.CompilerParams(
            dimension_semantics=("parallel", "parallel"),
            vmem_limit_bytes=32 * 1024 * 1024),
    )(x2, s2, mean, inv_std, w1, b1, w2g, b2g, w2b, b2b)

    return out.reshape(N, C, H, W)


def adain_reference(x, s, w1, b1, w2, b2):
    """Pure-JAX reference matching the PyTorch forward."""
    mean = jnp.mean(x, axis=(2, 3), keepdims=True)
    var = jnp.mean((x - mean) ** 2, axis=(2, 3), keepdims=True)
    normalized = (x - mean) / jnp.sqrt(var + EPS)
    h = jnp.einsum('oc,nchw->nohw', w1, s) + b1.reshape(1, -1, 1, 1)
    h = jnp.maximum(h, 0.0)
    gb = jnp.einsum('oc,nchw->nohw', w2, h) + b2.reshape(1, -1, 1, 1)
    C = x.shape[1]
    gamma, beta = gb[:, :C], gb[:, C:]
    return normalized * (1 + gamma) + beta


if __name__ == "__main__":
    # Small shapes consistent with the module's forward:
    #   x (content): [N, C, H, W], s (style): [N, Cs, H, W]
    N, C, Cs, H, W = 2, 4, 4, 16, 16
    hidden = 32  # hidden_filters

    key = jax.random.PRNGKey(0)
    kx, ks, kw1, kb1, kw2, kb2 = jax.random.split(key, 6)

    x = jax.random.normal(kx, (N, C, H, W), dtype=jnp.float32)
    s = jax.random.normal(ks, (N, Cs, H, W), dtype=jnp.float32)

    # Deterministic synthetic parameters (1x1 conv weights, squeezed to 2D).
    w1 = 0.1 * jax.random.normal(kw1, (hidden, Cs), dtype=jnp.float32)
    b1 = 0.1 * jax.random.normal(kb1, (hidden, 1), dtype=jnp.float32)
    w2 = 0.1 * jax.random.normal(kw2, (2 * C, hidden), dtype=jnp.float32)
    b2 = 0.1 * jax.random.normal(kb2, (2 * C, 1), dtype=jnp.float32)

    out = adain_forward(x, s, w1, b1, w2, b2)
    out = jax.block_until_ready(out)

    ref = adain_reference(x, s, w1, b1, w2, b2)
    assert out.shape == (N, C, H, W)
    assert jnp.allclose(out, ref, atol=1e-4, rtol=1e-4), "mismatch vs JAX reference"

    print("KERNEL_OK")
</pallas_src>

<mosaic_0001>
module attributes {stable_mosaic.version = 11 : i64} {
  func.func @_stats_kernel(%arg0: i32, %arg1: i32, %arg2: memref<1x4x256xf32, #tpu.memory_space<vmem>>, %arg3: memref<1x4x1xf32, #tpu.memory_space<vmem>>, %arg4: memref<1x4x1xf32, #tpu.memory_space<vmem>>, %arg5: memref<4x1xf32, #tpu.memory_space<vmem>>, %arg6: memref<4x1xf32, #tpu.memory_space<vmem>>) attributes {dimension_semantics = [#tpu.dimension_semantics<parallel>, #tpu.dimension_semantics<arbitrary>], iteration_bounds = array<i64: 2, 1>, scalar_prefetch = 0 : i64, scratch_operands = 2 : i64, tpu.core_type = #tpu.core_type<tc>, window_params = [{transform_indices = @transform_0, window_bounds = array<i64: 1, 4, 256>}, {transform_indices = @transform_1, window_bounds = array<i64: 1, 4, 1>}, {transform_indices = @transform_2, window_bounds = array<i64: 1, 4, 1>}]} {
    %c0_i32 = arith.constant 0 : i32
    %0 = arith.cmpi eq, %arg1, %c0_i32 : i32
    %1 = arith.extui %0 : i1 to i32
    %c0_i32_0 = arith.constant 0 : i32
    %2 = arith.cmpi ne, %1, %c0_i32_0 : i32
    scf.if %2 {
      %cst_14 = arith.constant 0.000000e+00 : f32
      %19 = vector.broadcast %cst_14 : f32 to vector<4x1xf32>
      %c0_15 = arith.constant 0 : index
      %c0_16 = arith.constant 0 : index
      %20 = vector.load %arg5[%c0_15, %c0_16] : memref<4x1xf32, #tpu.memory_space<vmem>>, vector<4x1xf32>
      tpu.vector_store %arg5[%c0_15, %c0_16], %19 {strides = array<i32>} : memref<4x1xf32, #tpu.memory_space<vmem>>, vector<4x1xf32>,
      %cst_17 = arith.constant 0.000000e+00 : f32
      %21 = vector.broadcast %cst_17 : f32 to vector<4x1xf32>
      %c0_18 = arith.constant 0 : index
      %c0_19 = arith.constant 0 : index
      %22 = vector.load %arg6[%c0_18, %c0_19] : memref<4x1xf32, #tpu.memory_space<vmem>>, vector<4x1xf32>
      tpu.vector_store %arg6[%c0_18, %c0_19], %21 {strides = array<i32>} : memref<4x1xf32, #tpu.memory_space<vmem>>, vector<4x1xf32>,
    } else {
    }
    %c0 = arith.constant 0 : index
    %c0_1 = arith.constant 0 : index
    %c0_2 = arith.constant 0 : index
    %3 = vector.load %arg2[%c0, %c0_1, %c0_2] : memref<1x4x256xf32, #tpu.memory_space<vmem>>, vector<1x4x256xf32>
    %4 = vector.shape_cast %3 : vector<1x4x256xf32> to vector<4x256xf32>
    %c0_3 = arith.constant 0 : index
    %c0_4 = arith.constant 0 : index
    %5 = vector.load %arg5[%c0_3, %c0_4] : memref<4x1xf32, #tpu.memory_space<vmem>>, vector<4x1xf32>
    %cst = arith.constant dense<0.000000e+00> : vector<4xf32>
    %6 = vector.multi_reduction <add>, %4, %cst [1] : vector<4x256xf32> to vector<4xf32>
    %7 = vector.shape_cast %6 : vector<4xf32> to vector<4x1xf32>
    %8 = arith.addf %5, %7 : vector<4x1xf32>
    %c0_5 = arith.constant 0 : index
    %c0_6 = arith.constant 0 : index
    %9 = vector.load %arg5[%c0_5, %c0_6] : memref<4x1xf32, #tpu.memory_space<vmem>>, vector<4x1xf32>
    tpu.vector_store %arg5[%c0_5, %c0_6], %8 {strides = array<i32>} : memref<4x1xf32, #tpu.memory_space<vmem>>, vector<4x1xf32>,
    %c0_7 = arith.constant 0 : index
    %c0_8 = arith.constant 0 : index
    %10 = vector.load %arg6[%c0_7, %c0_8] : memref<4x1xf32, #tpu.memory_space<vmem>>, vector<4x1xf32>
    %11 = arith.mulf %4, %4 : vector<4x256xf32>
    %cst_9 = arith.constant dense<0.000000e+00> : vector<4xf32>
    %12 = vector.multi_reduction <add>, %11, %cst_9 [1] : vector<4x256xf32> to vector<4xf32>
    %13 = vector.shape_cast %12 : vector<4xf32> to vector<4x1xf32>
    %14 = arith.addf %10, %13 : vector<4x1xf32>
    %c0_10 = arith.constant 0 : index
    %c0_11 = arith.constant 0 : index
    %15 = vector.load %arg6[%c0_10, %c0_11] : memref<4x1xf32, #tpu.memory_space<vmem>>, vector<4x1xf32>
    tpu.vector_store %arg6[%c0_10, %c0_11], %14 {strides = array<i32>} : memref<4x1xf32, #tpu.memory_space<vmem>>, vector<4x1xf32>,
    %c0_i32_12 = arith.constant 0 : i32
    %16 = arith.cmpi eq, %arg1, %c0_i32_12 : i32
    %17 = arith.extui %16 : i1 to i32
    %c0_i32_13 = arith.constant 0 : i32
    %18 = arith.cmpi ne, %17, %c0_i32_13 : i32
    scf.if %18 {
      %c0_14 = arith.constant 0 : index
      %c0_15 = arith.constant 0 : index
      %19 = vector.load %arg5[%c0_14, %c0_15] : memref<4x1xf32, #tpu.memory_space<vmem>>, vector<4x1xf32>
      %cst_16 = arith.constant 3.906250e-03 : f32
      %20 = vector.broadcast %cst_16 : f32 to vector<4x1xf32>
      %21 = arith.mulf %19, %20 : vector<4x1xf32>
      %c0_17 = arith.constant 0 : index
      %c0_18 = arith.constant 0 : index
      %22 = vector.load %arg6[%c0_17, %c0_18] : memref<4x1xf32, #tpu.memory_space<vmem>>, vector<4x1xf32>
      %cst_19 = arith.constant 3.906250e-03 : f32
      %23 = vector.broadcast %cst_19 : f32 to vector<4x1xf32>
      %24 = arith.mulf %22, %23 : vector<4x1xf32>
      %25 = arith.mulf %21, %21 : vector<4x1xf32>
      %26 = arith.subf %24, %25 : vector<4x1xf32>
      %c0_20 = arith.constant 0 : index
      %c0_21 = arith.constant 0 : index
      %c0_22 = arith.constant 0 : index
      %27 = vector.load %arg3[%c0_20, %c0_21, %c0_22] : memref<1x4x1xf32, #tpu.memory_space<vmem>>, vector<1x4x1xf32>
      %28 = vector.shape_cast %27 : vector<1x4x1xf32> to vector<4x1xf32>
      %29 = vector.shape_cast %21 : vector<4x1xf32> to vector<1x4x1xf32>
      tpu.vector_store %arg3[%c0_20, %c0_21, %c0_22], %29 {strides = array<i32>} : memref<1x4x1xf32, #tpu.memory_space<vmem>>, vector<1x4x1xf32>,
      %cst_23 = arith.constant 9.99999974E-6 : f32
      %30 = vector.broadcast %cst_23 : f32 to vector<4x1xf32>
      %31 = arith.addf %26, %30 : vector<4x1xf32>
      %32 = math.rsqrt %31 : vector<4x1xf32>
      %c0_24 = arith.constant 0 : index
      %c0_25 = arith.constant 0 : index
      %c0_26 = arith.constant 0 : index
      %33 = vector.load %arg4[%c0_24, %c0_25, %c0_26] : memref<1x4x1xf32, #tpu.memory_space<vmem>>, vector<1x4x1xf32>
      %34 = vector.shape_cast %33 : vector<1x4x1xf32> to vector<4x1xf32>
      %35 = vector.shape_cast %32 : vector<4x1xf32> to vector<1x4x1xf32>
      tpu.vector_store %arg4[%c0_24, %c0_25, %c0_26], %35 {strides = array<i32>} : memref<1x4x1xf32, #tpu.memory_space<vmem>>, vector<1x4x1xf32>,
    } else {
    }
    return
  }
  func.func @transform_0(%arg0: i32, %arg1: i32) -> (i32, i32, i32) {
    %c0_i32 = arith.constant 0 : i32
    %c0_i32_0 = arith.constant 0 : i32
    return %arg0, %c0_i32, %arg1 : i32, i32, i32
  }
  func.func @transform_1(%arg0: i32, %arg1: i32) -> (i32, i32, i32) {
    %c0_i32 = arith.constant 0 : i32
    %c0_i32_0 = arith.constant 0 : i32
    %c0_i32_1 = arith.constant 0 : i32
    return %arg0, %c0_i32, %c0_i32_0 : i32, i32, i32
  }
  func.func @transform_2(%arg0: i32, %arg1: i32) -> (i32, i32, i32) {
    %c0_i32 = arith.constant 0 : i32
    %c0_i32_0 = arith.constant 0 : i32
    %c0_i32_1 = arith.constant 0 : i32
    return %arg0, %c0_i32, %c0_i32_0 : i32, i32, i32
  }
}

</mosaic_0001>

<bundles_post_ra>
// kernel: tpu_custom_call.1
= control target key start
LH: loop header
LB: loop body
LE: loop exit
PB: predicated region body
PF: predicated region fallthrough
CT: control target
= control target key end

     0   :  { %8 = vsyncpa [#allocation5], 0  ;;  %s620_s0 = inlined_call_operand.hbm [shape: f32[2,4,256], index: 0, kind: input, shape index: {}]   ;;  %s621_s1 = inlined_call_operand.vmem [shape: f32[2,4,1], index: 1, kind: output, shape index: {0}]   ;;  %s622_s2 = inlined_call_operand.vmem [shape: f32[2,4,1], index: 2, kind: output, shape index: {1}]  }
   0x1   :  { %10 = vsyncpa [#allocation5 + $0x1], 0  ;;  %s511_s9 = smov 0   ;;  %s513_s10 = smov 0  }
   0x2   :  { %s515_s11 = smov 0   ;;  %s517_s12 = smov 0  }
   0x3   :  { %s519_s13 = smov 0   ;;  %s521_s14 = smov 0  }
   0x4 LB: > { %s341_s15 = sadd.s32 4294967295, %s492_s14   ;;  %s28_s16 = sadd.s32 1, %s488_s13  ;;  %s492_s14 = sphi %s521_s14, %s16_s14   ;;  %s488_s13 = sphi %s519_s13, %s630_s13   ;;  %s484_s12 = sphi %s517_s12, %s629_s12   ;;  %s480_s11 = sphi %s515_s11, %s628_s11   ;;  %s476_s10 = sphi %s513_s10, %s627_s10   ;;  %s472_s9 = sphi %s511_s9, %s626_s9  }
   0x5   : > { %p30_p0 = scmp.ge.s32.totalorder %s28_s16, 2  ;;  %s37_s17 = sadd.s32 1, %s480_s11 }
   0x6   : > { %p44_p1 = scmp.ne.s32.totalorder %s480_s11, %s476_s10  ;;  %p45_p2 = scmp.eq.s32.totalorder %s492_s14, 0 }
   0x7   : > { %s632_s16 = smov (%p30_p0, %s28_s16), 0  ;;  %p50_p4 = scmp.ne.s32.totalorder %s476_s10, %s472_s9 }
   0x8   : > { %p547_p3 = por %p45_p2, %p44_p1  ;;  %s32_s19 = ssub.s32 %s488_s13, %s632_s16 }
   0x9   : > { %p51_p5 = scmp.eq.s32.totalorder %s341_s15, 0  ;;  %p35_p6 = scmp.eq.s32.totalorder %s32_s19, 0 }
   0xa   : > { %p361_p8 = scmp.lt.s32.totalorder %s492_s14, 2  ;;  %s126_s22 = sand.u32 1, %s480_s11  }
   0xb   : > { %p554_p7 = por %p51_p5, %p50_p4  ;;  %s354_s23 = sshll.u32 %s488_s13, 7 }
   0xc   : > { %s560_s21 = scalar_select %p35_p6, %s480_s11, %s37_s17  }
   0xd   : > { %s345_s24 = sshll.u32 %s126_s22, 3  ;;  %s138_s27 = scalar_lea.hbm %s620_s0, %s354_s23 }
   0xe   : > { %s130_s28 = scalar_lea.vmem [#allocation4], %s345_s24  ;;  %p569_p9 = pnand %p361_p8, %p547_p3 }
   0xf   : > { %s140_s29 = sshll.u32 %s130_s28, 4  ;;  %p348_p10 = scmp.ge.s32.totalorder %s492_s14, 1  ;;  %s141_s29 = int_to_ptr.vmem [resolvable:$true] %s140_s29 }
  0x10   : > { %p145_p11 = scmp.lt.s32.totalorder %s492_s14, 3  ;;  %s127_s3 = scalar_lea.sflag [#allocation5], %s126_s22 }
  0x11   : > { %p416_p12 = pneg %p569_p9  ;;  %s427_s4 = scalar_lea.vmem %s141_s29, 128 }
  0x12   : > { %p428_p13 = scmp.ne.s32.totalorder %s141_s29, %s427_s4  ;;  %s494_s5 = smov [#allocation4]  }
  0x13   : > { %s432_s6 = sshll.u32 %s494_s5, 4  ;;  %s433_s6 = int_to_ptr.vmem [resolvable:$false] %s432_s6 }
  0x14   : > { %p430_p0 = pnand %p428_p13, %p416_p12  ;;  %s434_s7 = scalar_lea.vmem %s433_s6, 256 }
  0x15   : > { %p435_p2 = scmp.lt.s32.totalorder %s141_s29, %s433_s6  ;;  %p436_p3 = scmp.lt.s32.totalorder %s434_s7, %s427_s4 }
  0x16   : > { %p431_p1 = pneg %p430_p0 }
  0x17   : > { %p437_p4 = por %p436_p3, %p435_p2 }
  0x19   : > { %p438_p5 = pnand %p437_p4, %p431_p1 }
  0x1b   : > { %441 = shalt.err (!%p438_p5)
}
  0x1c   : > { %360 = dma.hbm_to_vmem [thread:$0]  (!%p569_p9), %s138_s27, 128, %s141_s29, %s127_s3  }
  0x1d   : > { %p146_p6 = pnand %p348_p10, %p145_p11 }
  0x1e   : > { %s151_s8 = sand.u32 (!%p146_p6), 1, %s476_s10  }
  0x1f   : > { %149 = sbr.rel (%p146_p6) target bundleno = 216 (0xd8), region = 24  ;;  %s349_s9 = sshll.u32 (!%p146_p6), %s151_s8, 3 }
  0x20   : > { %s152_s15 = scalar_lea.sflag (!%p146_p6), [#allocation5], %s151_s8  ;;  %s155_s17 = scalar_lea.vmem (!%p146_p6), [#allocation4], %s349_s9 }
  0x24   : > { %467 = dma.done.wait (%p554_p7), %s152_s15, 128  }
  0x25   : > { %469 = vsyncadd (%p554_p7), %s152_s15, 4294967168  ;;  %vm192_vm0 = vcmask 3072   ;;  %v495_v0 = vmov 0.0   ;;  %vm200_vm1 = vcmask 1043456   ;;  %v195_v1 = vld [vmem:[%s155_s17] sm:$0xff]  ;;  %p180_p7 = scmp.lt.s32.totalorder %s484_s12, 1 }
  0x26   : > { %193 = vst.msk [vmem:[#allocation2] sm:$0xf] %vm192_vm0, %v495_v0  ;;  %194 = vst.msk [vmem:[#allocation3] sm:$0xf] %vm192_vm0, %v495_v0  ;;  %v198_v2 = vcombine.high %v195_v1, %v195_v1  ;;  %v201_v3 = vsel %vm200_vm1, %v195_v1, 0.0  ;;  %v210_v4 = vmul.f32 %v195_v1, %v195_v1 }
  0x27   : > { %s634_s12 = smov (!%p180_p7, %s484_s12), 1 }
  0x28   : > { %v202_v5 = vsel %vm200_vm1, %v198_v2, 0.0  ;;  %v212_v6 = vcombine.high %v210_v4, %v210_v4  ;;  %v214_v7 = vsel %vm200_vm1, %v210_v4, 0.0  ;;  %s350_s18 = sshll.u32 %s634_s12, 2 }
  0x29   : > { %v203_v8 = vadd.f32 %v202_v5, %v201_v3  ;;  %s183_s22 = scalar_lea.vmem %s621_s1, %s350_s18  ;;  %s187_s12 = scalar_lea.vmem %s622_s2, %s350_s18 }
  0x2a   : > { %v215_v9 = vsel %vm200_vm1, %v212_v6, 0.0 }
  0x2b   : > { %204 = vadd.xlane.f32.xlu0 %v203_v8  ;;  %v216_v10 = vadd.f32 %v215_v9, %v214_v7 }
  0x2d   : > { %v196_v11 = vld [vmem:[#allocation2] sm:$0xf]  ;;  %v209_v14 = vld [vmem:[#allocation3] sm:$0xf] }
  0x2f   : > { %217 = vadd.xlane.f32.xlu0 %v216_v10 }
  0xb4   : > { %v205_v12 = vpop.xlane.xlu0 %204 }
  0xb5   : > { %v206_v13 = vadd.f32 %v205_v12, %v196_v11 }
  0xb7   : > { %208 = vst.msk [vmem:[#allocation2] sm:$0xf] %vm192_vm0, %v206_v13 }
  0xb8   : > { %v218_v15 = vpop.xlane.xlu0 %217 }
  0xb9   : > { %v219_v16 = vadd.f32 %v218_v15, %v209_v14 }
  0xbb   : > { %220 = vst.msk [vmem:[#allocation3] sm:$0xf] %vm192_vm0, %v219_v16 }
  0xbe   : > { %v224_v17 = vld [vmem:[#allocation2] sm:$0xf] }
  0xbf   : > { %v225_v18 = vmul.f32 0.00390625, %v224_v17 }
  0xc1   : > { %230 = vst.msk [vmem:[%s183_s22] sm:$0xf] %vm192_vm0, %v225_v18  ;;  %v228_v20 = vmul.f32 %v225_v18, %v225_v18 }
  0xc2   : > { %v226_v19 = vld [vmem:[#allocation3] sm:$0xf] }
  0xc3   : > { %v227_v21 = vmul.f32 0.00390625, %v226_v19 }
  0xc5   : > { %v229_v22 = vsub.f32 %v227_v21, %v228_v20 }
  0xc7   : > { %v231_v23 = vadd.f32 1e-05, %v229_v22 }
  0xc9   : > { %412 = vrsqrt.f32 %v231_v23 }
  0xd6   : > { %v413_v24 = vpop.eup %412 }
  0xd7   : > { %233 = vst.msk [vmem:[%s187_s12] sm:$0xf] %vm192_vm0, %v413_v24 }
  0xd8 PF: > { %s16_s14 = sadd.s32 1, %s492_s14   ;;  %s626_s9 = smov %s476_s10 }
  0xd9   : > { %p13_p8 = scmp.ge.s32.totalorder %s16_s14, 4   ;;  %s627_s10 = smov %s480_s11 }
  0xda   : > { %s628_s11 = smov %s560_s21  ;;  %s629_s12 = smov %s488_s13 }
  0xdb   : > { %s630_s13 = smov %s632_s16  ;;  %15 = sbr.rel (!%p13_p8) target bundleno = 4 (0x4), region = 84 }
  0xe0   :  { %267 = vsyncpa [#allocation5], 1 }
  0xe1   :  { %269 = vsyncpa [#allocation5 + $0x1], 1 }

</bundles_post_ra>
